<compile_context>
chip_gen: v6e
topology: v6e:2x2x1
jax: 0.10.0
libtpu: 0.0.40
codegen_flags: <defaults>
</compile_context>

<pallas_src>
import jax
import jax.numpy as jnp
from jax.experimental import pallas as pl
from jax.experimental.pallas import tpu as pltpu


def _drop_path_kernel(x_ref, scale_ref, o_ref):
    """x_ref/o_ref: VMEM (TB, M) in x.dtype. scale_ref: VMEM (TB, 1) in x.dtype."""
    o_ref[...] = x_ref[...] * scale_ref[...]


def _round_up(x: int, m: int) -> int:
    return ((x + m - 1) // m) * m


def _vmem_budget_bytes() -> int:
    """Scoped-VMEM budget derived from hardware, with 25% headroom."""
    try:
        cap = int(pltpu.get_tpu_info().vmem_capacity_bytes)
    except Exception:
        cap = 64 * 1024 * 1024  # conservative fallback == v7x per-TC physical VMEM
    return (cap * 3) // 4        # ~48 MiB on v7x, ~96 MiB on v5e/v6e


def _choose_block_rows(batch: int, row_bytes: int, itemsize: int,
                       vmem_budget: int,
                       target_block_bytes: int = 8 * 1024 * 1024) -> int:
    """Rows (samples) per block.

    * dtype-aware sublane multiple (f32: 8, bf16: 16, int8/fp8: 32) keeps packed
      tiles full and stores unmasked,
    * ~target_block_bytes per block amortizes the ~0.35us per-grid-step overhead
      even at v7x HBM rates,
    * 2x double-buffered input + 2x output blocks fit the VMEM budget,
    * tb does NOT need to divide batch (grid uses pl.cdiv; ragged last block),
    * keeps >= 2 grid steps when batch allows -> megacore split on v7x.
    """
    mult = {4: 8, 2: 16, 1: 32}.get(itemsize, 8)
    if batch <= mult:
        return batch  # single full-dim block (legal even when < 8 rows)

    # VMEM cap: 2x(in) + 2x(out) double-buffered main blocks must fit.
    vmem_rows = vmem_budget // (4 * row_bytes)
    if vmem_rows < 8:
        # TODO(synk): add an M (lane) grid axis for rows too wide for VMEM.
        raise ValueError("DropPath: an 8-row block does not fit in VMEM "
                         "(row too wide); M-tiling not implemented.")

    target_rows = max(mult, target_block_bytes // row_bytes)
    tb = min(vmem_rows, target_rows, _round_up(batch, mult))
    tb = (tb // mult) * mult if tb >= mult else (tb // 8) * 8

    # v7x megacore: prefer >= 2 grid steps so ("parallel",) can use both TCs.
    if pl.cdiv(batch, tb) < 2:
        gran = mult if batch >= 2 * mult else 8
        half = _round_up(pl.cdiv(batch, 2), gran)
        if half < batch:
            tb = min(tb, half)
    return tb


def drop_path(x, drop_prob: float = 0.0, training: bool = False, *,
              key=None, donate_x: bool = False):
    """Pallas implementation of drop_path(x, drop_prob, training)."""
    if drop_prob == 0.0 or not training:
        return x
    if key is None:
        raise ValueError("key required when training with drop_prob > 0")
    drop_prob = float(drop_prob)
    keep_prob = 1.0 - drop_prob

    B = x.shape[0]
    M = 1
    for d in x.shape[1:]:
        M *= d
    M = max(M, 1)  # 1-D input edge case: lane width 1 (masked stores; harmless)
    x2 = x.reshape(B, M)  # row-major collapse is layout-free; lane-dense last dim

    # Per-sample keep decision precomputed in plain JAX (tiny (B,1) array).
    # floor(keep_prob + u) == 1  <=>  u >= drop_prob   (for u in [0, 1))
    rand = jax.random.uniform(key, (B, 1), dtype=jnp.float32)
    scale = jnp.where(rand >= jnp.float32(drop_prob),
                      jnp.float32(1.0 / keep_prob),
                      jnp.float32(0.0)).astype(x.dtype)

    itemsize = x.dtype.itemsize
    row_bytes = M * itemsize
    budget = _vmem_budget_bytes()
    tb = _choose_block_rows(B, row_bytes, itemsize, budget)
    grid = (pl.cdiv(B, tb),)

    # Safety net: double-buffered in/out blocks (+ tiny scale blocks) fit VMEM.
    block_bytes = tb * row_bytes
    if 4 * block_bytes + 4 * tb * itemsize > budget:
        raise ValueError("DropPath block does not fit the VMEM budget")

    out2 = pl.pallas_call(
        _drop_path_kernel,
        out_shape=jax.ShapeDtypeStruct((B, M), x.dtype),
        grid_spec=pltpu.PrefetchScalarGridSpec(
            num_scalar_prefetch=0,
            grid=grid,
            in_specs=[pl.BlockSpec((tb, M), lambda i: (i, 0)),
                      pl.BlockSpec((tb, 1), lambda i: (i, 0))],
            out_specs=pl.BlockSpec((tb, M), lambda i: (i, 0)),
        ),
        compiler_params=pltpu.CompilerParams(
            dimension_semantics=("parallel",),
            vmem_limit_bytes=int(budget)),
        input_output_aliases=({0: 0} if donate_x else {}),
    )(x2, scale)
    return out2.reshape(x.shape)


class DropPath:
    """Drop paths (Stochastic Depth) per sample — Pallas-backed."""

    def __init__(self, drop_prob=None):
        self.drop_prob = 0.0 if drop_prob is None else float(drop_prob)
        self.training = True  # mimic nn.Module.train() default for the demo

    def __call__(self, x, key=None):
        return drop_path(x, self.drop_prob, self.training, key=key)


if __name__ == "__main__":
    root = jax.random.PRNGKey(0)
    k_x, k_drop, k_x2, k_drop2, k_x3, k_drop3 = jax.random.split(root, 6)

    # --- Small ViT-token-like input: batch=2, seq=8, hidden=32 (f32). ---
    B, N, C = 2, 8, 32
    x = jax.random.normal(k_x, (B, N, C), dtype=jnp.float32)
    drop_prob = 0.25
    keep_prob = 1.0 - drop_prob
    module = DropPath(drop_prob)

    out = jax.block_until_ready(module(x, key=k_drop))
    assert out.shape == x.shape and out.dtype == x.dtype

    # Reference using the exact same uniform draws as the kernel wrapper.
    rand = jax.random.uniform(k_drop, (B, 1), dtype=jnp.float32)
    mask = (rand >= drop_prob).astype(jnp.float32).reshape(B, 1, 1)
    ref = x / keep_prob * mask  # PyTorch-style formulation
    assert jnp.allclose(out, ref, atol=1e-5, rtol=1e-5)

    # --- bf16 path: lane-dense 128 hidden, dtype-aware (16-row) blocking. ---
    B2, N2, C2 = 16, 8, 128
    x2 = jax.random.normal(k_x2, (B2, N2, C2), dtype=jnp.bfloat16)
    out2 = jax.block_until_ready(drop_path(x2, 0.5, True, key=k_drop2))
    rand2 = jax.random.uniform(k_drop2, (B2, 1), dtype=jnp.float32)
    scale2 = jnp.where(rand2 >= 0.5, jnp.float32(2.0),
                       jnp.float32(0.0)).astype(jnp.bfloat16).reshape(B2, 1, 1)
    ref2 = x2 * scale2
    assert out2.shape == x2.shape and out2.dtype == jnp.bfloat16
    assert jnp.allclose(out2.astype(jnp.float32), ref2.astype(jnp.float32),
                        atol=1e-2, rtol=1e-2)

    # --- Ragged batch (B=10, not a divisor-friendly size): multi-step grid with
    #     a ragged last block; also exercises the >=2-grid-step (megacore) path.
    B3, N3, C3 = 10, 8, 64
    x3 = jax.random.normal(k_x3, (B3, N3, C3), dtype=jnp.float32)
    p3 = 0.2
    out3 = jax.block_until_ready(drop_path(x3, p3, True, key=k_drop3))
    rand3 = jax.random.uniform(k_drop3, (B3, 1), dtype=jnp.float32)
    scale3 = jnp.where(rand3 >= p3, jnp.float32(1.0 / (1.0 - p3)),
                       jnp.float32(0.0)).reshape(B3, 1, 1)
    assert out3.shape == x3.shape
    assert jnp.allclose(out3, x3 * scale3, atol=1e-6, rtol=1e-6)

    # Eval path / drop_prob == 0 -> identity (matches PyTorch early return).
    module.training = False
    out_eval = jax.block_until_ready(module(x, key=k_drop))
    assert jnp.array_equal(out_eval, x)
    assert jnp.array_equal(drop_path(x, 0.0, True, key=k_drop), x)

    print("KERNEL_OK")
</pallas_src>

<mosaic_0001>
module attributes {stable_mosaic.version = 11 : i64} {
  func.func @_drop_path_kernel(%arg0: i32, %arg1: memref<2x256xf32, #tpu.memory_space<vmem>>, %arg2: memref<2x1xf32, #tpu.memory_space<vmem>>, %arg3: memref<2x256xf32, #tpu.memory_space<vmem>>) attributes {dimension_semantics = [#tpu.dimension_semantics<parallel>], iteration_bounds = array<i64: 1>, scalar_prefetch = 0 : i64, scratch_operands = 0 : i64, tpu.core_type = #tpu.core_type<tc>, window_params = [{transform_indices = @transform_0, window_bounds = array<i64: 2, 256>}, {transform_indices = @transform_1, window_bounds = array<i64: 2, 1>}, {transform_indices = @transform_2, window_bounds = array<i64: 2, 256>}]} {
    %c0 = arith.constant 0 : index
    %c0_0 = arith.constant 0 : index
    %0 = vector.load %arg1[%c0, %c0_0] : memref<2x256xf32, #tpu.memory_space<vmem>>, vector<2x256xf32>
    %c0_1 = arith.constant 0 : index
    %c0_2 = arith.constant 0 : index
    %1 = vector.load %arg2[%c0_1, %c0_2] : memref<2x1xf32, #tpu.memory_space<vmem>>, vector<2x1xf32>
    %2 = vector.broadcast %1 : vector<2x1xf32> to vector<2x256xf32>
    %3 = arith.mulf %0, %2 : vector<2x256xf32>
    %c0_3 = arith.constant 0 : index
    %c0_4 = arith.constant 0 : index
    %4 = vector.load %arg3[%c0_3, %c0_4] : memref<2x256xf32, #tpu.memory_space<vmem>>, vector<2x256xf32>
    tpu.vector_store %arg3[%c0_3, %c0_4], %3 {strides = array<i32>} : memref<2x256xf32, #tpu.memory_space<vmem>>, vector<2x256xf32>,
    return
  }
  func.func @transform_0(%arg0: i32) -> (i32, i32) {
    %c0_i32 = arith.constant 0 : i32
    %c0_i32_0 = arith.constant 0 : i32
    return %arg0, %c0_i32 : i32, i32
  }
  func.func @transform_1(%arg0: i32) -> (i32, i32) {
    %c0_i32 = arith.constant 0 : i32
    %c0_i32_0 = arith.constant 0 : i32
    return %arg0, %c0_i32 : i32, i32
  }
  func.func @transform_2(%arg0: i32) -> (i32, i32) {
    %c0_i32 = arith.constant 0 : i32
    %c0_i32_0 = arith.constant 0 : i32
    return %arg0, %c0_i32 : i32, i32
  }
}

</mosaic_0001>

<bundles_post_ra>
// kernel: tpu_custom_call.1
= control target key start
LH: loop header
LB: loop body
LE: loop exit
PB: predicated region body
PF: predicated region fallthrough
CT: control target
= control target key end

     0   :  { %7 = vsyncpa [#allocation3], 0  ;;  %s132_s0 = inlined_call_operand.hbm [shape: f32[2,256], index: 0, kind: input, shape index: {}]   ;;  %s133_s1 = inlined_call_operand.vmem [shape: f32[2,1], index: 1, kind: input, shape index: {}]   ;;  %s134_s2 = inlined_call_operand.hbm [shape: f32[2,256], index: 2, kind: output, shape index: {}]  }
   0x1   :  { %8 = vsyncpa [#allocation4], 0  ;;  %s104_s9 = smov [#allocation2]  }
   0x2   :  { %s15_s10 = sshll.u32 %s104_s9, 4  ;;  %s16_s10 = int_to_ptr.vmem [resolvable:$true] %s15_s10 }
   0x3   :  { %s68_s11 = scalar_lea.vmem %s16_s10, 64  ;;  %p73_p1 = scmp.lt.s32.totalorder %s16_s10, %s16_s10 }
   0x4   :  { %p69_p0 = scmp.ne.s32.totalorder %s16_s10, %s68_s11  ;;  %p74_p2 = scmp.lt.s32.totalorder %s68_s11, %s68_s11 }
   0x6   :  { %p75_p3 = por %p74_p2, %p73_p1 }
   0x8   :  { %p76_p4 = pnand %p75_p3, %p69_p0 }
   0xa   :  { %79 = shalt.err (!%p76_p4)
}
   0xb   :  { %18 = dma.hbm_to_vmem [thread:$0]  %s132_s0, 64, %s16_s10, [#allocation3]  }
   0xc   :  { %100 = dma.done.wait [#allocation3], 64  }
   0xd   :  { %101 = vsyncadd [#allocation3], 4294967232  ;;  %v105_v0 = vmov 0   ;;  %v25_v1 = vld [vmem:[%s133_s1] sm:$0x3]  ;;  %v33_v4 = vlaneseq  ;;  %s107_s16 = smov [#allocation5]  }
   0xe   :  { %59 = vset.pattern.permute.xlu0 %v105_v0  ;;  %v106_v2 = vmov 269488144   ;;  %v24_v9 = vld [vmem:[#allocation2] sm:$0xf]  ;;  %s46_s17 = sshll.u32 %s107_s16, 4  ;;  %s47_s17 = int_to_ptr.vmem [resolvable:$true] %s46_s17 }
   0xf   :  { %28 = vperm.xlu0 %59, %v25_v1   ;;  %v31_v3 = vunpack.c.l.s4 %v106_v2  ;;  %v34_v6 = vshrl.u32 %v33_v4, 7  ;;  %s80_s0 = scalar_lea.vmem %s47_s17, 64  ;;  %p85_p6 = scmp.lt.s32.totalorder %s47_s17, %s47_s17 }
  0x10   :  { %p81_p5 = scmp.ne.s32.totalorder %s47_s17, %s80_s0  ;;  %p86_p7 = scmp.lt.s32.totalorder %s80_s0, %s80_s0 }
  0x11   :  { %v32_v5 = vunpack.c.0.s8 %v31_v3 }
  0x12   :  { %p87_p8 = por %p86_p7, %p85_p6 }
  0x13   :  { %v35_v7 = vsub.s32 %v32_v5, %v34_v6 }
  0x14   :  { %p88_p9 = pnand %p87_p8, %p81_p5 }
  0x8a   :  { %v29_v8 = vpop.permute.xlu0 %28 }
  0x8b   :  { %v36_v10 = vrot.slane %v29_v8, %v35_v7 }
  0x8d   :  { %v38_v11 = vmul.f32 %v36_v10, %v24_v9 }
  0x8f   :  { %39 = vst [vmem:[#allocation5] sm:$0xf] %v38_v11 }
  0x90   :  { %91 = shalt.err (!%p88_p9)
}
  0x91   :  { %49 = dma.vmem_to_hbm [thread:$0]  %s47_s17, 64, %s134_s2, [#allocation4]  }
  0x92   :  { %102 = dma.done.wait [#allocation4], 64  }
  0x93   :  { %103 = vsyncadd [#allocation4], 4294967232 }
  0x94   :  { %53 = vsyncpa [#allocation3], 1 }
  0x95   :  { %54 = vsyncpa [#allocation4], 1 }

</bundles_post_ra>
